<compile_context>
chip_gen: v7x
topology: tpu7x:2x2x1
jax: 0.10.0
libtpu: 0.0.40
codegen_flags: <defaults>
</compile_context>

<pallas_src>
import jax
import jax.numpy as jnp
from jax.experimental import pallas as pl
from jax.experimental.pallas import tpu as pltpu


def _round_up(x, m):
    return ((x + m - 1) // m) * m


def _make_mlp_kernel(num_inputs):
    """Build the kernel for a given (static) number of positional inputs."""

    def kernel(*refs):
        x_refs = refs[:num_inputs]
        w1_ref, b1_ref, w2_ref, b2_ref, out_ref = refs[num_inputs:]

        # Elementwise sum of the K positional inputs (f32, VPU).
        x = x_refs[0][...]
        for r in x_refs[1:]:
            x = x + r[...]

        # fc1 + ReLU: bf16 MXU inputs, f32 accumulate, f32 bias add.
        # (Hidden width is zero-padded to a lane-dense multiple of 128; padded
        #  columns produce relu(0 + 0) = 0 and contribute nothing to fc2.)
        h = jnp.dot(x.astype(jnp.bfloat16), w1_ref[...],
                    preferred_element_type=jnp.float32) + b1_ref[...]
        h = jnp.maximum(h, 0.0)

        # fc2 (output columns are zero-padded to a lane-dense width).
        y = jnp.dot(h.astype(jnp.bfloat16), w2_ref[...],
                    preferred_element_type=jnp.float32) + b2_ref[...]
        out_ref[...] = y.astype(out_ref.dtype)

    return kernel


def neural_net_positional_arguments(model_inputs, w1, b1, w2, b2, *, block_m=512):
    """model_inputs: tuple/list of arrays, each (N, D). Returns (N, C) float32."""
    model_inputs = tuple(model_inputs)
    K = len(model_inputs)
    N, D = model_inputs[0].shape
    H = w1.shape[1]
    C = w2.shape[1]

    # Lane-dense hidden and output widths: pad up to multiples of 128.
    H_pad = _round_up(H, 128)
    C_pad = _round_up(C, 128)

    # Batch tile: as large as comfortably fits VMEM (multiple of 8 sublanes),
    # clamped so resident weights + double-buffered tiles stay well under the
    # v7x 64 MiB VMEM (and the 32 MiB scoped limit we request).
    def _vmem_est(t):
        weights = (D * H_pad + H_pad * C_pad) * 2 + (H_pad + C_pad) * 4  # bf16 W, f32 b
        acts = 2 * (K * t * D * 4 + t * C_pad * 4)                       # dbl-buffered in/out
        interm = 2 * t * max(H_pad, C_pad) * 4                           # headroom for h/y
        return weights + acts + interm

    tm = min(block_m, _round_up(N, 8))
    while tm > 8 and _vmem_est(tm) > 20 * 1024 * 1024:
        tm = max(8, _round_up(tm // 2, 8))

    n_pad = _round_up(N, tm)
    if n_pad != N:
        model_inputs = tuple(
            jnp.pad(x, ((0, n_pad - N), (0, 0))) for x in model_inputs)

    # Weights cast to bf16 once (halves weight DMA, native MXU width); fc1 is
    # zero-padded on the hidden axis and fc2 on both hidden and class axes so
    # every MXU operand and the output tile are lane-dense.
    w1b = jnp.pad(w1.astype(jnp.bfloat16), ((0, 0), (0, H_pad - H)))
    b1p = jnp.pad(b1, ((0, 0), (0, H_pad - H)))
    w2b = jnp.pad(w2.astype(jnp.bfloat16), ((0, H_pad - H), (0, C_pad - C)))
    b2p = jnp.pad(b2, ((0, 0), (0, C_pad - C)))

    x_spec = pl.BlockSpec((tm, D), lambda i: (i, 0))
    resident = lambda i: (0, 0)   # weights/biases stay VMEM-resident across steps

    out = pl.pallas_call(
        _make_mlp_kernel(K),
        out_shape=jax.ShapeDtypeStruct((n_pad, C_pad), jnp.float32),
        grid=(n_pad // tm,),
        in_specs=[x_spec] * K + [
            pl.BlockSpec((D, H_pad), resident),
            pl.BlockSpec((1, H_pad), resident),
            pl.BlockSpec((H_pad, C_pad), resident),
            pl.BlockSpec((1, C_pad), resident),
        ],
        out_specs=pl.BlockSpec((tm, C_pad), lambda i: (i, 0)),
        compiler_params=pltpu.CompilerParams(
            dimension_semantics=("parallel",),
            vmem_limit_bytes=32 * 1024 * 1024,
        ),
    )(*model_inputs, w1b, b1p, w2b, b2p)

    return out[:N, :C]


def init_params(key, input_size, hidden_size, num_classes):
    """Deterministic init matching torch.nn.Linear's U(-1/sqrt(fan_in), 1/sqrt(fan_in)).

    Weights are returned pre-transposed to (in, out)."""
    k1, k2, k3, k4 = jax.random.split(key, 4)
    bound1 = 1.0 / (input_size ** 0.5)
    bound2 = 1.0 / (hidden_size ** 0.5)
    w1 = jax.random.uniform(k1, (input_size, hidden_size), jnp.float32, -bound1, bound1)
    b1 = jax.random.uniform(k2, (1, hidden_size), jnp.float32, -bound1, bound1)
    w2 = jax.random.uniform(k3, (hidden_size, num_classes), jnp.float32, -bound2, bound2)
    b2 = jax.random.uniform(k4, (1, num_classes), jnp.float32, -bound2, bound2)
    return w1, b1, w2, b2


if __name__ == "__main__":
    # Small shapes consistent with the module's forward.
    batch = 8
    input_size = 32
    hidden_size = 64
    num_classes = 16
    num_positional_inputs = 3   # forward(*model_inputs)

    key = jax.random.PRNGKey(0)
    pkey, xkey = jax.random.split(key)
    w1, b1, w2, b2 = init_params(pkey, input_size, hidden_size, num_classes)

    xkeys = jax.random.split(xkey, num_positional_inputs)
    model_inputs = tuple(
        jax.random.normal(k, (batch, input_size), jnp.float32) for k in xkeys
    )

    out = neural_net_positional_arguments(model_inputs, w1, b1, w2, b2)
    out = jax.block_until_ready(out)
    assert out.shape == (batch, num_classes)

    # Reference 1: same bf16-input / f32-accumulate math as the kernel (tight).
    x_sum = model_inputs[0]
    for x in model_inputs[1:]:
        x_sum = x_sum + x
    h = jnp.dot(x_sum.astype(jnp.bfloat16), w1.astype(jnp.bfloat16),
                preferred_element_type=jnp.float32) + b1
    h = jnp.maximum(h, 0.0)
    ref_bf16 = jnp.dot(h.astype(jnp.bfloat16), w2.astype(jnp.bfloat16),
                       preferred_element_type=jnp.float32) + b2
    assert jnp.allclose(out, ref_bf16, atol=2e-3, rtol=2e-3)

    # Reference 2: pure f32 module semantics (loose, covers bf16 MXU inputs).
    ref_f32 = jnp.maximum(x_sum @ w1 + b1, 0.0) @ w2 + b2
    assert jnp.allclose(out, ref_f32, atol=5e-2, rtol=5e-2)

    print("KERNEL_OK")
</pallas_src>

<mosaic_0001>
module attributes {stable_mosaic.version = 11 : i64} {
  func.func @kernel(%arg0: i32, %arg1: memref<8x32xf32, #tpu.memory_space<vmem>>, %arg2: memref<8x32xf32, #tpu.memory_space<vmem>>, %arg3: memref<8x32xf32, #tpu.memory_space<vmem>>, %arg4: memref<32x128xbf16, #tpu.memory_space<vmem>>, %arg5: memref<1x128xf32, #tpu.memory_space<vmem>>, %arg6: memref<128x128xbf16, #tpu.memory_space<vmem>>, %arg7: memref<1x128xf32, #tpu.memory_space<vmem>>, %arg8: memref<8x128xf32, #tpu.memory_space<vmem>>) attributes {dimension_semantics = [#tpu.dimension_semantics<parallel>], iteration_bounds = array<i64: 1>, scalar_prefetch = 0 : i64, scratch_operands = 0 : i64, tpu.core_type = #tpu.core_type<tc>, window_params = [{transform_indices = @transform_0, window_bounds = array<i64: 8, 32>}, {transform_indices = @transform_1, window_bounds = array<i64: 8, 32>}, {transform_indices = @transform_2, window_bounds = array<i64: 8, 32>}, {pipeline_mode = #tpu.pipeline_mode<synchronous>, transform_indices = @transform_3, window_bounds = array<i64: 32, 128>}, {pipeline_mode = #tpu.pipeline_mode<synchronous>, transform_indices = @transform_4, window_bounds = array<i64: 1, 128>}, {pipeline_mode = #tpu.pipeline_mode<synchronous>, transform_indices = @transform_5, window_bounds = array<i64: 128, 128>}, {pipeline_mode = #tpu.pipeline_mode<synchronous>, transform_indices = @transform_6, window_bounds = array<i64: 1, 128>}, {transform_indices = @transform_7, window_bounds = array<i64: 8, 128>}]} {
    %c0 = arith.constant 0 : index
    %c0_0 = arith.constant 0 : index
    %0 = vector.load %arg1[%c0, %c0_0] : memref<8x32xf32, #tpu.memory_space<vmem>>, vector<8x32xf32>
    %c0_1 = arith.constant 0 : index
    %c0_2 = arith.constant 0 : index
    %1 = vector.load %arg2[%c0_1, %c0_2] : memref<8x32xf32, #tpu.memory_space<vmem>>, vector<8x32xf32>
    %2 = arith.addf %0, %1 : vector<8x32xf32>
    %c0_3 = arith.constant 0 : index
    %c0_4 = arith.constant 0 : index
    %3 = vector.load %arg3[%c0_3, %c0_4] : memref<8x32xf32, #tpu.memory_space<vmem>>, vector<8x32xf32>
    %4 = arith.addf %2, %3 : vector<8x32xf32>
    %5 = arith.truncf %4 : vector<8x32xf32> to vector<8x32xbf16>
    %c0_5 = arith.constant 0 : index
    %c0_6 = arith.constant 0 : index
    %6 = vector.load %arg4[%c0_5, %c0_6] : memref<32x128xbf16, #tpu.memory_space<vmem>>, vector<32x128xbf16>
    %cst = arith.constant dense<0.000000e+00> : vector<8x128xf32>
    %7 = tpu.matmul %5, %6, %cst {dimension_numbers = #tpu.dot_dimension_numbers<[1], [0], [0], [1], [0, 0, 1, 1], [], []>} : vector<8x32xbf16>, vector<32x128xbf16>, vector<8x128xf32> -> vector<8x128xf32>
    %c0_7 = arith.constant 0 : index
    %c0_8 = arith.constant 0 : index
    %8 = vector.load %arg5[%c0_7, %c0_8] : memref<1x128xf32, #tpu.memory_space<vmem>>, vector<1x128xf32>
    %9 = vector.broadcast %8 : vector<1x128xf32> to vector<8x128xf32>
    %10 = arith.addf %7, %9 : vector<8x128xf32>
    %cst_9 = arith.constant 0.000000e+00 : f32
    %11 = vector.broadcast %cst_9 : f32 to vector<8x128xf32>
    %12 = arith.maximumf %10, %11 : vector<8x128xf32>
    %13 = arith.truncf %12 : vector<8x128xf32> to vector<8x128xbf16>
    %c0_10 = arith.constant 0 : index
    %c0_11 = arith.constant 0 : index
    %14 = vector.load %arg6[%c0_10, %c0_11] : memref<128x128xbf16, #tpu.memory_space<vmem>>, vector<128x128xbf16>
    %cst_12 = arith.constant dense<0.000000e+00> : vector<8x128xf32>
    %15 = tpu.matmul %13, %14, %cst_12 {dimension_numbers = #tpu.dot_dimension_numbers<[1], [0], [0], [1], [0, 0, 1, 1], [], []>} : vector<8x128xbf16>, vector<128x128xbf16>, vector<8x128xf32> -> vector<8x128xf32>
    %c0_13 = arith.constant 0 : index
    %c0_14 = arith.constant 0 : index
    %16 = vector.load %arg7[%c0_13, %c0_14] : memref<1x128xf32, #tpu.memory_space<vmem>>, vector<1x128xf32>
    %17 = vector.broadcast %16 : vector<1x128xf32> to vector<8x128xf32>
    %18 = arith.addf %15, %17 : vector<8x128xf32>
    %c0_15 = arith.constant 0 : index
    %c0_16 = arith.constant 0 : index
    %19 = vector.load %arg8[%c0_15, %c0_16] : memref<8x128xf32, #tpu.memory_space<vmem>>, vector<8x128xf32>
    tpu.vector_store %arg8[%c0_15, %c0_16], %18 {strides = array<i32>} : memref<8x128xf32, #tpu.memory_space<vmem>>, vector<8x128xf32>,
    return
  }
  func.func @transform_0(%arg0: i32) -> (i32, i32) {
    %c0_i32 = arith.constant 0 : i32
    %c0_i32_0 = arith.constant 0 : i32
    return %arg0, %c0_i32 : i32, i32
  }
  func.func @transform_1(%arg0: i32) -> (i32, i32) {
    %c0_i32 = arith.constant 0 : i32
    %c0_i32_0 = arith.constant 0 : i32
    return %arg0, %c0_i32 : i32, i32
  }
  func.func @transform_2(%arg0: i32) -> (i32, i32) {
    %c0_i32 = arith.constant 0 : i32
    %c0_i32_0 = arith.constant 0 : i32
    return %arg0, %c0_i32 : i32, i32
  }
  func.func @transform_3(%arg0: i32) -> (i32, i32) {
    %c0_i32 = arith.constant 0 : i32
    %c0_i32_0 = arith.constant 0 : i32
    %c0_i32_1 = arith.constant 0 : i32
    return %c0_i32, %c0_i32_0 : i32, i32
  }
  func.func @transform_4(%arg0: i32) -> (i32, i32) {
    %c0_i32 = arith.constant 0 : i32
    %c0_i32_0 = arith.constant 0 : i32
    %c0_i32_1 = arith.constant 0 : i32
    return %c0_i32, %c0_i32_0 : i32, i32
  }
  func.func @transform_5(%arg0: i32) -> (i32, i32) {
    %c0_i32 = arith.constant 0 : i32
    %c0_i32_0 = arith.constant 0 : i32
    %c0_i32_1 = arith.constant 0 : i32
    return %c0_i32, %c0_i32_0 : i32, i32
  }
  func.func @transform_6(%arg0: i32) -> (i32, i32) {
    %c0_i32 = arith.constant 0 : i32
    %c0_i32_0 = arith.constant 0 : i32
    %c0_i32_1 = arith.constant 0 : i32
    return %c0_i32, %c0_i32_0 : i32, i32
  }
  func.func @transform_7(%arg0: i32) -> (i32, i32) {
    %c0_i32 = arith.constant 0 : i32
    %c0_i32_0 = arith.constant 0 : i32
    return %arg0, %c0_i32 : i32, i32
  }
}

</mosaic_0001>

<bundles_post_ra>
// kernel: tpu_custom_call.1
= control target key start
LH: loop header
LB: loop body
LE: loop exit
PB: predicated region body
PF: predicated region fallthrough
CT: control target
= control target key end

     0   :  { %12 = vsyncpa [#allocation3], 0  ;;  %s648_s0 = inlined_call_operand.hbm [shape: f32[8,32], index: 0, kind: input, shape index: {}]   ;;  %s649_s1 = inlined_call_operand.hbm [shape: f32[8,32], index: 1, kind: input, shape index: {}]   ;;  %s650_s2 = inlined_call_operand.hbm [shape: f32[8,32], index: 2, kind: input, shape index: {}]   ;;  %s651_s3 = inlined_call_operand.hbm [shape: bf16[32,128], index: 3, kind: input, shape index: {}]   ;;  %s652_s4 = inlined_call_operand.vmem [shape: f32[1,128], index: 4, kind: input, shape index: {}]   ;;  %s653_s5 = inlined_call_operand.hbm [shape: bf16[128,128], index: 5, kind: input, shape index: {}]   ;;  %s654_s6 = inlined_call_operand.vmem [shape: f32[1,128], index: 6, kind: input, shape index: {}]   ;;  %s655_s7 = inlined_call_operand.hbm [shape: f32[8,128], index: 7, kind: output, shape index: {}]  }
   0x1   :  { %13 = vsyncpa [#allocation6], 0 }
   0x2   :  { %14 = vsyncpa [#allocation9], 0 }
   0x3   :  { %15 = vsyncpa [#allocation4], 0  ;;  %s507_s24 = smov [#allocation5]   ;;  %s508_s26 = smov [#allocation8]  }
   0x4   :  { %s32_s25 = sshll.u32 %s507_s24, 4  ;;  %s51_s27 = sshll.u32 %s508_s26, 4  ;;  %s33_s25 = int_to_ptr.vmem [resolvable:$true] %s32_s25  ;;  %s557_s27 = int_to_ptr.vmem [resolvable:$true] %s51_s27 }
   0x5   :  { %s367_s30 = scalar_lea.hbm %s649_s1, 128 }
   0x6   :  { %p368_p0 = scmp.ne.s32.totalorder %s649_s1, %s367_s30  ;;  %p371_p1 = scmp.lt.u32.totalorder %s367_s30, %s649_s1 }
   0x8   :  { %p373_p2 = pnand %p371_p1, %p368_p0 }
   0xa   :  { %376 = shalt.err (!%p373_p2)
}
   0xb   :  { %s377_s12 = scalar_lea.vmem %s33_s25, 128  ;;  %p382_p4 = scmp.lt.s32.totalorder %s33_s25, %s33_s25 }
   0xc   :  { %p378_p3 = scmp.ne.s32.totalorder %s33_s25, %s377_s12  ;;  %p383_p5 = scmp.lt.s32.totalorder %s377_s12, %s377_s12 }
   0xe   :  { %p384_p6 = por %p383_p5, %p382_p4 }
  0x10   :  { %p385_p7 = pnand %p384_p6, %p378_p3 }
  0x12   :  { %388 = shalt.err (!%p385_p7)
}
  0x13   :  { %35 = dma.hbm_to_vmem [thread:$0]  %s649_s1, 128, %s33_s25, [#allocation6]  }
  0x14   :  { %s389_s17 = scalar_lea.hbm %s651_s3, 256 }
  0x15   :  { %p390_p8 = scmp.ne.s32.totalorder %s651_s3, %s389_s17  ;;  %p393_p9 = scmp.lt.u32.totalorder %s389_s17, %s651_s3 }
  0x17   :  { %p395_p10 = pnand %p393_p9, %p390_p8 }
  0x19   :  { %398 = shalt.err (!%p395_p10)
}
  0x1a   :  { %s399_s22 = scalar_lea.vmem %s557_s27, 256  ;;  %p404_p12 = scmp.lt.s32.totalorder %s557_s27, %s557_s27 }
  0x1b   :  { %p400_p11 = scmp.ne.s32.totalorder %s557_s27, %s399_s22  ;;  %p405_p13 = scmp.lt.s32.totalorder %s399_s22, %s399_s22 }
  0x1d   :  { %p406_p0 = por %p405_p13, %p404_p12 }
  0x1f   :  { %p407_p1 = pnand %p406_p0, %p400_p11 }
  0x21   :  { %410 = shalt.err (!%p407_p1)
}
  0x22   :  { %s509_s1 = smov 64   ;;  %s510_s23 = smov 4  }
  0x23   :  { %57 = dma.hbm_to_vmem [thread:$0]  %s651_s3, 256, %s557_s27, [#allocation9], %s509_s1, %s509_s1, %s510_s23  }
  0x24   :  { %s511_s26 = smov [#allocation2]   ;;  %s512_s29 = smov [#allocation7]  }
  0x25   :  { %s22_s28 = sshll.u32 %s511_s26, 4  ;;  %s42_s30 = sshll.u32 %s512_s29, 4  ;;  %s23_s28 = int_to_ptr.vmem [resolvable:$true] %s22_s28  ;;  %s43_s30 = int_to_ptr.vmem [resolvable:$true] %s42_s30 }
  0x26   :  { %s411_s10 = scalar_lea.hbm %s648_s0, 128 }
  0x27   :  { %p412_p2 = scmp.ne.s32.totalorder %s648_s0, %s411_s10  ;;  %p415_p3 = scmp.lt.u32.totalorder %s411_s10, %s648_s0 }
  0x29   :  { %p417_p4 = pnand %p415_p3, %p412_p2 }
  0x2b   :  { %420 = shalt.err (!%p417_p4)
}
  0x2c   :  { %s421_s3 = scalar_lea.vmem %s23_s28, 128  ;;  %p426_p6 = scmp.lt.s32.totalorder %s23_s28, %s23_s28 }
  0x2d   :  { %p422_p5 = scmp.ne.s32.totalorder %s23_s28, %s421_s3  ;;  %p427_p7 = scmp.lt.s32.totalorder %s421_s3, %s421_s3 }
  0x2f   :  { %p428_p8 = por %p427_p7, %p426_p6 }
  0x31   :  { %p429_p9 = pnand %p428_p8, %p422_p5 }
  0x33   :  { %432 = shalt.err (!%p429_p9)
}
  0x34   :  { %25 = dma.hbm_to_vmem [thread:$0]  %s648_s0, 128, %s23_s28, [#allocation3]  }
  0x35   :  { %s433_s18 = scalar_lea.hbm %s650_s2, 128 }
  0x36   :  { %p434_p10 = scmp.ne.s32.totalorder %s650_s2, %s433_s18  ;;  %p437_p11 = scmp.lt.u32.totalorder %s433_s18, %s650_s2 }
  0x38   :  { %p439_p12 = pnand %p437_p11, %p434_p10 }
  0x3a   :  { %442 = shalt.err (!%p439_p12)
}
  0x3b   :  { %s443_s24 = scalar_lea.vmem %s43_s30, 128  ;;  %p448_p0 = scmp.lt.s32.totalorder %s43_s30, %s43_s30 }
  0x3c   :  { %p444_p13 = scmp.ne.s32.totalorder %s43_s30, %s443_s24  ;;  %p449_p1 = scmp.lt.s32.totalorder %s443_s24, %s443_s24 }
  0x3e   :  { %p450_p2 = por %p449_p1, %p448_p0 }
  0x40   :  { %p451_p3 = pnand %p450_p2, %p444_p13 }
  0x42   :  { %454 = shalt.err (!%p451_p3)
}
  0x43   :  { %45 = dma.hbm_to_vmem [thread:$0]  %s650_s2, 128, %s43_s30, [#allocation6]  }
  0x44   :  { %s513_s26 = smov [#allocation10]   ;;  %s455_s9 = scalar_lea.hbm %s653_s5, 1024 }
  0x45   :  { %s65_s28 = sshll.u32 %s513_s26, 4  ;;  %p456_p4 = scmp.ne.s32.totalorder %s653_s5, %s455_s9  ;;  %s66_s28 = int_to_ptr.vmem [resolvable:$true] %s65_s28 }
  0x46   :  { %p459_p5 = scmp.lt.u32.totalorder %s455_s9, %s653_s5 }
  0x48   :  { %p461_p6 = pnand %p459_p5, %p456_p4 }
  0x4a   :  { %464 = shalt.err (!%p461_p6)
}
  0x4b   :  { %s465_s14 = scalar_lea.vmem %s66_s28, 1024  ;;  %p470_p8 = scmp.lt.s32.totalorder %s66_s28, %s66_s28 }
  0x4c   :  { %p466_p7 = scmp.ne.s32.totalorder %s66_s28, %s465_s14  ;;  %p471_p9 = scmp.lt.s32.totalorder %s465_s14, %s465_s14 }
  0x4e   :  { %p472_p10 = por %p471_p9, %p470_p8 }
  0x50   :  { %p473_p11 = pnand %p472_p10, %p466_p7 }
  0x52   :  { %476 = shalt.err (!%p473_p11)
}
  0x53   :  { %71 = dma.hbm_to_vmem [thread:$0]  %s653_s5, 1024, %s66_s28, [#allocation9], %s509_s1, %s509_s1, %s510_s23  }
  0x54   :  { %499 = dma.done.wait [#allocation3], 128  }
  0x55   :  { %500 = vsyncadd [#allocation3], 4294967168 }
  0x56   :  { %501 = dma.done.wait [#allocation6], 256  }
  0x57   :  { %502 = vsyncadd [#allocation6], 4294967040 }
  0x58   :  { %503 = dma.done.wait [#allocation9], 1280  }
  0x59   :  { %504 = vsyncadd [#allocation9], 4294966016  ;;  %v514_v0 = vmov 0.0   ;;  %vm515_vm0 = vmmov 0   ;;  %v357_v1 = vld [vmem:[#allocation8] sm:$0xff]   ;;  %v358_v2 = vld [vmem:[#allocation8 + $0x8] sm:$0xff]  }
  0x5a   :  { %319 = vmatprep.subr.bf16.mxu0 %v514_v0  ;;  %323 = vmatprep.mubr.msk.bf16.mxu0 %vm515_vm0, %v514_v0  ;;  %v90_v3 = vld [vmem:[#allocation2] sm:$0xff]  ;;  %v91_v4 = vld [vmem:[#allocation5] sm:$0xff]  ;;  %v93_v5 = vld [vmem:[#allocation7] sm:$0xff]  ;;  %vm119_vm1 = vcmask 261120   ;;  %s516_s27 = smov [#allocation11]  }
  0x5b   :  { %327 = vmatprep.subr.bf16.mxu1 %v514_v0  ;;  %343 = vmatprep.mubr.msk.bf16.mxu1 %vm515_vm0, %v514_v0  ;;  %v92_v6 = vadd.f32 %v91_v4, %v90_v3  ;;  %v359_v7 = vld [vmem:[#allocation10] sm:$0xff]   ;;  %v360_v9 = vld [vmem:[#allocation10 + $0x8] sm:$0xff]   ;;  %v361_v11 = vld [vmem:[#allocation10 + $0x10] sm:$0xff]   ;;  %s283_s15 = sshll.u32 %s516_s27, 4  ;;  %s284_s15 = int_to_ptr.vmem [resolvable:$true] %s283_s15 }
  0x5c   :  { %320 = vmatpush3.bf16.msra.mxu0 %v357_v1  ;;  %328 = vmatpush3.bf16.msra.mxu1 %v359_v7  ;;  %v362_v12 = vld [vmem:[#allocation10 + $0x18] sm:$0xff]   ;;  %v363_v13 = vld [vmem:[#allocation10 + $0x20] sm:$0xff]   ;;  %v364_v14 = vld [vmem:[#allocation10 + $0x28] sm:$0xff]   ;;  %p482_p13 = scmp.lt.s32.totalorder %s284_s15, %s284_s15 }
  0x5d   :  { %321 = vmatprep.subr.bf16.mxu0 %v514_v0  ;;  %v94_v8 = vadd.f32 %v93_v5, %v92_v6  ;;  %329 = vmatprep.subr.bf16.mxu1 %v514_v0  ;;  %v365_v15 = vld [vmem:[#allocation10 + $0x30] sm:$0xff]   ;;  %v366_v16 = vld [vmem:[#allocation10 + $0x38] sm:$0xff]  }
  0x5e   :  { %v294_v17 = vld [vmem:[%s652_s4] ss:$0 sm:$0xff]  ;;  %s477_s4 = scalar_lea.vmem %s284_s15, 128 }
  0x5f   :  { %v95_v10 = vpack.c.bf16 %v94_v8, %v94_v8  ;;  %v298_v25 = vld [vmem:[%s654_s6] ss:$0 sm:$0xff]  ;;  %p478_p12 = scmp.ne.s32.totalorder %s284_s15, %s477_s4  ;;  %p483_p0 = scmp.lt.s32.totalorder %s477_s4, %s477_s4 }
  0x60   :  { %322 = vmatpush3.bf16.msra.mxu0 %v358_v2  ;;  %330 = vmatpush3.bf16.msra.mxu1 %v360_v9 }
  0x61   :  { %331 = vmatprep.subr.bf16.mxu1 %v514_v0  ;;  %p484_p1 = por %p483_p0, %p482_p13 }
  0x63   :  { %324 = vmatmul.mubr.msk.bf16.vlgmr.msra.gmra.mrb[0].mxu0 %vm119_vm1, %v95_v10  ;;  %p485_p2 = pnand %p484_p1, %p478_p12 }
  0x64   :  { %332 = vmatpush3.bf16.msra.mxu1 %v361_v11 }
  0x65   :  { %333 = vmatprep.subr.bf16.mxu1 %v514_v0 }
  0x68   :  { %334 = vmatpush3.bf16.msra.mxu1 %v362_v12 }
  0x69   :  { %335 = vmatprep.subr.bf16.mxu1 %v514_v0 }
  0x6c   :  { %336 = vmatpush3.bf16.msra.mxu1 %v363_v13 }
  0x6d   :  { %337 = vmatprep.subr.bf16.mxu1 %v514_v0 }
  0x70   :  { %338 = vmatpush3.bf16.msra.mxu1 %v364_v14 }
  0x71   :  { %339 = vmatprep.subr.bf16.mxu1 %v514_v0 }
  0x74   :  { %340 = vmatpush3.bf16.msra.mxu1 %v365_v15 }
  0x75   :  { %341 = vmatprep.subr.bf16.mxu1 %v514_v0 }
  0x78   :  { %342 = vmatpush3.bf16.msra.mxu1 %v366_v16 }
 0x136   :  { %v157_v18 = vpop.f32.mrb[0].mxu0 }
 0x137   :  { %v158_v19 = vadd.f32 %v294_v17, %v157_v18  ;;  %v325_v20 = vpop.f32.mrb[1].mxu0 }
 0x138   :  { %v160_v21 = vpop.f32.mrb[2].mxu0 }
 0x139   :  { %v163_v22 = vmax.f32 %v158_v19, 0.0  ;;  %v326_v23 = vpop.f32.mrb[3].mxu0 }
 0x13b   :  { %v164_v24 = vpack.c.bf16 %v163_v22, %v163_v22 }
 0x13d   :  { %344 = vmatmul.mubr.bf16.vlgmr.msra.gmra.mrb[0].mxu1 %v164_v24 }
 0x210   :  { %v270_v26 = vpop.f32.mrb[0].mxu1 }
 0x211   :  { %v271_v27 = vadd.f32 %v298_v25, %v270_v26  ;;  %v345_v28 = vpop.f32.mrb[1].mxu1 }
 0x212   :  { %v273_v29 = vpop.f32.mrb[2].mxu1 }
 0x213   :  { %276 = vst [vmem:[#allocation11] sm:$0xff] %v271_v27  ;;  %v346_v30 = vpop.f32.mrb[3].mxu1 }
 0x214   :  { %488 = shalt.err (!%p485_p2)
}
 0x215   :  { %s489_s6 = scalar_lea.hbm %s655_s7, 128 }
 0x216   :  { %p490_p3 = scmp.ne.s32.totalorder %s655_s7, %s489_s6  ;;  %p493_p4 = scmp.lt.u32.totalorder %s489_s6, %s655_s7 }
 0x218   :  { %p495_p5 = pnand %p493_p4, %p490_p3 }
 0x21a   :  { %498 = shalt.err (!%p495_p5)
}
 0x21b   :  { %286 = dma.vmem_to_hbm [thread:$0]  %s284_s15, 128, %s655_s7, [#allocation4]  }
 0x21c   :  { %505 = dma.done.wait [#allocation4], 128  }
 0x21d   :  { %506 = vsyncadd [#allocation4], 4294967168 }
 0x21e   :  { %290 = vsyncpa [#allocation3], 1 }
 0x21f   :  { %291 = vsyncpa [#allocation6], 1 }
 0x220   :  { %292 = vsyncpa [#allocation9], 1 }
 0x221   :  { %293 = vsyncpa [#allocation4], 1 }

</bundles_post_ra>
